<compile_context>
chip_gen: v6e
topology: v6e:2x2x1
jax: 0.10.0
libtpu: 0.0.40
codegen_flags: <defaults>
</compile_context>

<pallas_src>
import functools

import jax
import jax.numpy as jnp
from jax.experimental import pallas as pl
from jax.experimental.pallas import tpu as pltpu


def _temporal_attention_kernel(xw_ref, u1rep_ref, u3rep_ref, u2t_ref, be_ref,
                               ve_ref, o_ref, *, nv, nf, nt, bt):
    """One batch block: xw_ref is (F*N, bt*T); output slab is (T, bt*T)."""
    f32 = jnp.float32
    xw = xw_ref[...]                          # (F*N, bt*T)
    xu1 = u1rep_ref[...] * xw                 # row f*N+n scaled by U1[n]
    xu3 = u3rep_ref[...] * xw                 # row f*N+n scaled by U3[f]

    # Factored (n, f) contractions; each per-feature slice is a free sublane
    # view because nv % 8 == 0 (asserted in the wrapper).
    z_rows = []
    rhs = None
    for j in range(nf):                       # static unroll over features
        sl = slice(j * nv, (j + 1) * nv)
        z_rows.append(jnp.sum(xu1[sl, :], axis=0, keepdims=True))   # (1, bt*T)
        rhs = xu3[sl, :] if rhs is None else rhs + xu3[sl, :]       # (N, bt*T)
    z1 = jnp.concatenate(z_rows, axis=0)                            # (F, bt*T)
    lhs_t = jnp.dot(u2t_ref[...], z1, preferred_element_type=f32)   # (N, bt*T)

    # Per-batch (T, T) products: the only stage whose operands are both
    # per-batch.  bt is kept small by _pick_batch_block so this static unroll
    # has a bounded live set (each piece is a single tiny (T, T) tile).
    prods = []
    for b in range(bt):
        lo = b * nt
        prods.append(jax.lax.dot_general(
            lhs_t[:, lo:lo + nt], rhs[:, lo:lo + nt],
            dimension_numbers=(((0,), (0,)), ((), ())),
            preferred_element_type=f32))                            # (T, T)
    prod = jnp.concatenate(prods, axis=1)                           # (T, bt*T)

    # Lane-dense epilogue: Ve is shared across batches so one matmul covers
    # the whole slab; softmax over axis 0 == softmax over dim=1 of (B, T, T).
    e = jnp.dot(ve_ref[...], jax.nn.sigmoid(prod + be_ref[...]),
                preferred_element_type=f32)                         # (T, bt*T)
    e = e - jnp.max(e, axis=0, keepdims=True)
    ex = jnp.exp(e)
    denom = jnp.sum(ex, axis=0, keepdims=True)
    inv = pl.reciprocal(denom, approx=True)       # EUP seed ...
    inv = inv * (2.0 - denom * inv)               # ... + 1 Newton step (f32 exact)
    o_ref[...] = ex * inv                         # single lane-dense store


def _pick_batch_block(batch, t, nf_rows, *, elem_bytes=4,
                      target_block_bytes=2 << 20, min_steps=4, max_unroll=32):
    """Choose the per-grid-step batch block.

    Valid blocks keep the BlockSpec lane dim either a multiple of 128 or equal
    to the full lane extent (batch * t).  Among valid blocks prefer, in order:
    input block <= ~2 MiB (double-buffer headroom on v7x's smaller VMEM),
    >= min_steps grid steps (pipelining), >= 128 active lanes (dense
    MXU/VPU/store), modest per-block unroll, then the smaller block.
    """
    valid = [bb for bb in range(1, batch + 1)
             if batch % bb == 0 and ((bb * t) % 128 == 0 or bb == batch)]

    def score(bb):
        steps = batch // bb
        block_bytes = nf_rows * bb * t * elem_bytes
        return (block_bytes <= target_block_bytes,
                steps >= min_steps,
                (bb * t) % 128 == 0 and bb * t >= 128,
                bb <= max_unroll,
                -bb)

    return max(valid, key=score)


def temporal_attention(x, u1, u2, u3, be, ve, *, batch_block=None):
    """x: (B, N, F, T) -> (B, T, T) temporal attention scores."""
    B, N, F, T = x.shape
    # Free sublane views of the per-feature slices require N % 8 == 0
    # (otherwise Mosaic would materialize a copy per slice).
    assert N % 8 == 0, f"num_of_vertices must be a multiple of 8, got {N}"
    if batch_block is None:
        batch_block = _pick_batch_block(B, T, N * F)
    assert B % batch_block == 0, (B, batch_block)
    # BlockSpec lane rule: block lane dim must be 128-aligned or full extent.
    assert (batch_block * T) % 128 == 0 or batch_block == B, (batch_block, T)
    num_steps = B // batch_block
    f32 = jnp.float32

    # Lane-dense input layout: xw[f*N + n, b*T + t] = x[b, n, f, t].
    # (One XLA transpose; a real producer would emit this layout directly.)
    xw = jnp.transpose(x.astype(f32), (2, 1, 0, 3)).reshape(F * N, B * T)

    # O(N*F) parameter prep (no kron densification).
    u1rep = jnp.tile(u1.astype(f32), F).reshape(F * N, 1)     # row f*N+n -> U1[n]
    u3rep = jnp.repeat(u3.astype(f32), N).reshape(F * N, 1)   # row f*N+n -> U3[f]
    u2t = u2.astype(f32).T                                    # (N, F)
    be_t = jnp.tile(be.astype(f32).reshape(T, T), (1, batch_block))  # (T, bt*T)
    ve2 = ve.astype(f32)

    kernel = functools.partial(_temporal_attention_kernel,
                               nv=N, nf=F, nt=T, bt=batch_block)
    out = pl.pallas_call(
        kernel,
        out_shape=jax.ShapeDtypeStruct((T, B * T), f32),
        grid=(num_steps,),
        in_specs=[
            pl.BlockSpec((F * N, batch_block * T), lambda i: (0, i)),
            pl.BlockSpec((F * N, 1), lambda i: (0, 0)),
            pl.BlockSpec((F * N, 1), lambda i: (0, 0)),
            pl.BlockSpec((N, F), lambda i: (0, 0)),
            pl.BlockSpec((T, batch_block * T), lambda i: (0, 0)),
            pl.BlockSpec((T, T), lambda i: (0, 0)),
        ],
        out_specs=pl.BlockSpec((T, batch_block * T), lambda i: (0, i)),
        compiler_params=pltpu.CompilerParams(
            dimension_semantics=("parallel",)),
    )(xw, u1rep, u3rep, u2t, be_t, ve2)

    # (T, B*T) -> (B, T, T); touches only B*T*T*4 bytes (lane-dense in HBM).
    return jnp.transpose(out.reshape(T, B, T), (1, 0, 2))


def reference(x, u1, u2, u3, be, ve):
    """Pure-JAX transcription of the PyTorch forward pass."""
    lhs = jnp.matmul(jnp.matmul(jnp.transpose(x, (0, 3, 2, 1)), u1), u2)  # (B,T,N)
    rhs = jnp.einsum("f,bnft->bnt", u3, x)                                # (B,N,T)
    product = jnp.matmul(lhs, rhs)                                        # (B,T,T)
    E = jnp.matmul(ve, jax.nn.sigmoid(product + be))                      # (B,T,T)
    return jax.nn.softmax(E, axis=1)


def _xavier_uniform(key, shape):
    fan_in, fan_out = shape[-2], shape[-1]
    limit = (6.0 / (fan_in + fan_out)) ** 0.5
    return jax.random.uniform(key, shape, jnp.float32, -limit, limit)


if __name__ == "__main__":
    # Shapes consistent with the module: B=2 batches, N=16 nodes, F=4 input
    # features, T=8 timesteps.
    B, N, F, T = 2, 16, 4, 8
    key = jax.random.PRNGKey(0)
    kx, k1, k2, k3, kb, kv = jax.random.split(key, 6)

    x = jax.random.normal(kx, (B, N, F, T), jnp.float32)
    # deterministic synthetic parameters (shapes from the module's __init__)
    u1 = jax.random.uniform(k1, (N,), jnp.float32)            # 1-D -> uniform init
    u2 = _xavier_uniform(k2, (F, N))                           # >1-D -> xavier
    u3 = jax.random.uniform(k3, (F,), jnp.float32)
    be = _xavier_uniform(kb, (1, T, T))
    ve = _xavier_uniform(kv, (T, T))

    out = temporal_attention(x, u1, u2, u3, be, ve)
    out = jax.block_until_ready(out)

    ref = reference(x, u1, u2, u3, be, ve)
    assert out.shape == (B, T, T), out.shape
    err = float(jnp.max(jnp.abs(out - ref)))
    assert jnp.allclose(out, ref, atol=2e-5, rtol=2e-5), err
    print("KERNEL_OK")
</pallas_src>

<mosaic_0001>
module attributes {stable_mosaic.version = 11 : i64} {
  func.func @_temporal_attention_kernel(%arg0: i32, %arg1: memref<64x16xf32, #tpu.memory_space<vmem>>, %arg2: memref<64x1xf32, #tpu.memory_space<vmem>>, %arg3: memref<64x1xf32, #tpu.memory_space<vmem>>, %arg4: memref<16x4xf32, #tpu.memory_space<vmem>>, %arg5: memref<8x16xf32, #tpu.memory_space<vmem>>, %arg6: memref<8x8xf32, #tpu.memory_space<vmem>>, %arg7: memref<8x16xf32, #tpu.memory_space<vmem>>) attributes {dimension_semantics = [#tpu.dimension_semantics<parallel>], iteration_bounds = array<i64: 1>, scalar_prefetch = 0 : i64, scratch_operands = 0 : i64, tpu.core_type = #tpu.core_type<tc>, window_params = [{transform_indices = @transform_0, window_bounds = array<i64: 64, 16>}, {pipeline_mode = #tpu.pipeline_mode<synchronous>, transform_indices = @transform_1, window_bounds = array<i64: 64, 1>}, {pipeline_mode = #tpu.pipeline_mode<synchronous>, transform_indices = @transform_2, window_bounds = array<i64: 64, 1>}, {pipeline_mode = #tpu.pipeline_mode<synchronous>, transform_indices = @transform_3, window_bounds = array<i64: 16, 4>}, {pipeline_mode = #tpu.pipeline_mode<synchronous>, transform_indices = @transform_4, window_bounds = array<i64: 8, 16>}, {pipeline_mode = #tpu.pipeline_mode<synchronous>, transform_indices = @transform_5, window_bounds = array<i64: 8, 8>}, {transform_indices = @transform_6, window_bounds = array<i64: 8, 16>}]} {
    %c0 = arith.constant 0 : index
    %c0_0 = arith.constant 0 : index
    %0 = vector.load %arg1[%c0, %c0_0] : memref<64x16xf32, #tpu.memory_space<vmem>>, vector<64x16xf32>
    %c0_1 = arith.constant 0 : index
    %c0_2 = arith.constant 0 : index
    %1 = vector.load %arg2[%c0_1, %c0_2] : memref<64x1xf32, #tpu.memory_space<vmem>>, vector<64x1xf32>
    %2 = vector.broadcast %1 : vector<64x1xf32> to vector<64x16xf32>
    %3 = arith.mulf %2, %0 : vector<64x16xf32>
    %c0_3 = arith.constant 0 : index
    %c0_4 = arith.constant 0 : index
    %4 = vector.load %arg3[%c0_3, %c0_4] : memref<64x1xf32, #tpu.memory_space<vmem>>, vector<64x1xf32>
    %5 = vector.broadcast %4 : vector<64x1xf32> to vector<64x16xf32>
    %6 = arith.mulf %5, %0 : vector<64x16xf32>
    %7 = vector.extract_strided_slice %3 {offsets = [0, 0], sizes = [16, 16], strides = [1, 1]} : vector<64x16xf32> to vector<16x16xf32>
    %cst = arith.constant dense<0.000000e+00> : vector<16xf32>
    %8 = vector.multi_reduction <add>, %7, %cst [0] : vector<16x16xf32> to vector<16xf32>
    %9 = vector.shape_cast %8 : vector<16xf32> to vector<1x16xf32>
    %10 = vector.extract_strided_slice %6 {offsets = [0, 0], sizes = [16, 16], strides = [1, 1]} : vector<64x16xf32> to vector<16x16xf32>
    %11 = vector.extract_strided_slice %3 {offsets = [16, 0], sizes = [16, 16], strides = [1, 1]} : vector<64x16xf32> to vector<16x16xf32>
    %cst_5 = arith.constant dense<0.000000e+00> : vector<16xf32>
    %12 = vector.multi_reduction <add>, %11, %cst_5 [0] : vector<16x16xf32> to vector<16xf32>
    %13 = vector.shape_cast %12 : vector<16xf32> to vector<1x16xf32>
    %14 = vector.extract_strided_slice %6 {offsets = [16, 0], sizes = [16, 16], strides = [1, 1]} : vector<64x16xf32> to vector<16x16xf32>
    %15 = arith.addf %10, %14 : vector<16x16xf32>
    %16 = vector.extract_strided_slice %3 {offsets = [32, 0], sizes = [16, 16], strides = [1, 1]} : vector<64x16xf32> to vector<16x16xf32>
    %cst_6 = arith.constant dense<0.000000e+00> : vector<16xf32>
    %17 = vector.multi_reduction <add>, %16, %cst_6 [0] : vector<16x16xf32> to vector<16xf32>
    %18 = vector.shape_cast %17 : vector<16xf32> to vector<1x16xf32>
    %19 = vector.extract_strided_slice %6 {offsets = [32, 0], sizes = [16, 16], strides = [1, 1]} : vector<64x16xf32> to vector<16x16xf32>
    %20 = arith.addf %15, %19 : vector<16x16xf32>
    %21 = vector.extract_strided_slice %3 {offsets = [48, 0], sizes = [16, 16], strides = [1, 1]} : vector<64x16xf32> to vector<16x16xf32>
    %cst_7 = arith.constant dense<0.000000e+00> : vector<16xf32>
    %22 = vector.multi_reduction <add>, %21, %cst_7 [0] : vector<16x16xf32> to vector<16xf32>
    %23 = vector.shape_cast %22 : vector<16xf32> to vector<1x16xf32>
    %24 = vector.extract_strided_slice %6 {offsets = [48, 0], sizes = [16, 16], strides = [1, 1]} : vector<64x16xf32> to vector<16x16xf32>
    %25 = arith.addf %20, %24 : vector<16x16xf32>
    %26 = tpu.concatenate %9, %13, %18, %23 in 0 : vector<1x16xf32>, vector<1x16xf32>, vector<1x16xf32>, vector<1x16xf32> -> vector<4x16xf32>
    %c0_8 = arith.constant 0 : index
    %c0_9 = arith.constant 0 : index
    %27 = vector.load %arg4[%c0_8, %c0_9] : memref<16x4xf32, #tpu.memory_space<vmem>>, vector<16x4xf32>
    %cst_10 = arith.constant dense<0.000000e+00> : vector<16x16xf32>
    %28 = tpu.matmul %27, %26, %cst_10 {dimension_numbers = #tpu.dot_dimension_numbers<[1], [0], [0], [1], [0, 0, 1, 1], [], []>} : vector<16x4xf32>, vector<4x16xf32>, vector<16x16xf32> -> vector<16x16xf32>
    %29 = vector.extract_strided_slice %28 {offsets = [0, 0], sizes = [16, 8], strides = [1, 1]} : vector<16x16xf32> to vector<16x8xf32>
    %30 = vector.extract_strided_slice %25 {offsets = [0, 0], sizes = [16, 8], strides = [1, 1]} : vector<16x16xf32> to vector<16x8xf32>
    %cst_11 = arith.constant dense<0.000000e+00> : vector<8x8xf32>
    %31 = tpu.matmul %29, %30, %cst_11 {dimension_numbers = #tpu.dot_dimension_numbers<[0], [0], [1], [1], [0, 1, 1, 1], [], []>} : vector<16x8xf32>, vector<16x8xf32>, vector<8x8xf32> -> vector<8x8xf32>
    %32 = vector.extract_strided_slice %28 {offsets = [0, 8], sizes = [16, 8], strides = [1, 1]} : vector<16x16xf32> to vector<16x8xf32>
    %33 = vector.extract_strided_slice %25 {offsets = [0, 8], sizes = [16, 8], strides = [1, 1]} : vector<16x16xf32> to vector<16x8xf32>
    %cst_12 = arith.constant dense<0.000000e+00> : vector<8x8xf32>
    %34 = tpu.matmul %32, %33, %cst_12 {dimension_numbers = #tpu.dot_dimension_numbers<[0], [0], [1], [1], [0, 1, 1, 1], [], []>} : vector<16x8xf32>, vector<16x8xf32>, vector<8x8xf32> -> vector<8x8xf32>
    %35 = tpu.concatenate %31, %34 in 1 : vector<8x8xf32>, vector<8x8xf32> -> vector<8x16xf32>
    %c0_13 = arith.constant 0 : index
    %c0_14 = arith.constant 0 : index
    %36 = vector.load %arg6[%c0_13, %c0_14] : memref<8x8xf32, #tpu.memory_space<vmem>>, vector<8x8xf32>
    %c0_15 = arith.constant 0 : index
    %c0_16 = arith.constant 0 : index
    %37 = vector.load %arg5[%c0_15, %c0_16] : memref<8x16xf32, #tpu.memory_space<vmem>>, vector<8x16xf32>
    %38 = arith.addf %35, %37 : vector<8x16xf32>
    %39 = arith.negf %38 : vector<8x16xf32>
    %40 = math.exp %39 : vector<8x16xf32>
    %cst_17 = arith.constant 1.000000e+00 : f32
    %41 = vector.broadcast %cst_17 : f32 to vector<8x16xf32>
    %42 = arith.addf %41, %40 : vector<8x16xf32>
    %43 = arith.divf %41, %42 : vector<8x16xf32>
    %cst_18 = arith.constant dense<0.000000e+00> : vector<8x16xf32>
    %44 = tpu.matmul %36, %43, %cst_18 {dimension_numbers = #tpu.dot_dimension_numbers<[1], [0], [0], [1], [0, 0, 1, 1], [], []>} : vector<8x8xf32>, vector<8x16xf32>, vector<8x16xf32> -> vector<8x16xf32>
    %cst_19 = arith.constant dense<0xFF800000> : vector<16xf32>
    %45 = vector.multi_reduction <maximumf>, %44, %cst_19 [0] : vector<8x16xf32> to vector<16xf32>
    %46 = vector.shape_cast %45 : vector<16xf32> to vector<1x16xf32>
    %47 = vector.broadcast %46 : vector<1x16xf32> to vector<8x16xf32>
    %48 = arith.subf %44, %47 : vector<8x16xf32>
    %49 = math.exp %48 : vector<8x16xf32>
    %cst_20 = arith.constant dense<0.000000e+00> : vector<16xf32>
    %50 = vector.multi_reduction <add>, %49, %cst_20 [0] : vector<8x16xf32> to vector<16xf32>
    %51 = vector.shape_cast %50 : vector<16xf32> to vector<1x16xf32>
    %52 = tpu.reciprocal %51 {approx = true} : vector<1x16xf32> -> vector<1x16xf32>
    %53 = arith.mulf %51, %52 : vector<1x16xf32>
    %cst_21 = arith.constant 2.000000e+00 : f32
    %54 = vector.broadcast %cst_21 : f32 to vector<1x16xf32>
    %55 = arith.subf %54, %53 : vector<1x16xf32>
    %56 = arith.mulf %52, %55 : vector<1x16xf32>
    %57 = vector.broadcast %56 : vector<1x16xf32> to vector<8x16xf32>
    %58 = arith.mulf %49, %57 : vector<8x16xf32>
    %c0_22 = arith.constant 0 : index
    %c0_23 = arith.constant 0 : index
    %59 = vector.load %arg7[%c0_22, %c0_23] : memref<8x16xf32, #tpu.memory_space<vmem>>, vector<8x16xf32>
    tpu.vector_store %arg7[%c0_22, %c0_23], %58 {strides = array<i32>} : memref<8x16xf32, #tpu.memory_space<vmem>>, vector<8x16xf32>,
    return
  }
  func.func @transform_0(%arg0: i32) -> (i32, i32) {
    %c0_i32 = arith.constant 0 : i32
    %c0_i32_0 = arith.constant 0 : i32
    return %c0_i32, %arg0 : i32, i32
  }
  func.func @transform_1(%arg0: i32) -> (i32, i32) {
    %c0_i32 = arith.constant 0 : i32
    %c0_i32_0 = arith.constant 0 : i32
    %c0_i32_1 = arith.constant 0 : i32
    return %c0_i32, %c0_i32_0 : i32, i32
  }
  func.func @transform_2(%arg0: i32) -> (i32, i32) {
    %c0_i32 = arith.constant 0 : i32
    %c0_i32_0 = arith.constant 0 : i32
    %c0_i32_1 = arith.constant 0 : i32
    return %c0_i32, %c0_i32_0 : i32, i32
  }
  func.func @transform_3(%arg0: i32) -> (i32, i32) {
    %c0_i32 = arith.constant 0 : i32
    %c0_i32_0 = arith.constant 0 : i32
    %c0_i32_1 = arith.constant 0 : i32
    return %c0_i32, %c0_i32_0 : i32, i32
  }
  func.func @transform_4(%arg0: i32) -> (i32, i32) {
    %c0_i32 = arith.constant 0 : i32
    %c0_i32_0 = arith.constant 0 : i32
    %c0_i32_1 = arith.constant 0 : i32
    return %c0_i32, %c0_i32_0 : i32, i32
  }
  func.func @transform_5(%arg0: i32) -> (i32, i32) {
    %c0_i32 = arith.constant 0 : i32
    %c0_i32_0 = arith.constant 0 : i32
    %c0_i32_1 = arith.constant 0 : i32
    return %c0_i32, %c0_i32_0 : i32, i32
  }
  func.func @transform_6(%arg0: i32) -> (i32, i32) {
    %c0_i32 = arith.constant 0 : i32
    %c0_i32_0 = arith.constant 0 : i32
    return %c0_i32, %arg0 : i32, i32
  }
}

</mosaic_0001>

<bundles_post_ra>
// kernel: tpu_custom_call.1
= control target key start
LH: loop header
LB: loop body
LE: loop exit
PB: predicated region body
PF: predicated region fallthrough
CT: control target
= control target key end

     0   :  { %v712_v2 = vmov 0   ;;  %s866_s0 = inlined_call_operand.vmem [shape: f32[64,16], index: 0, kind: input, shape index: {}]   ;;  %s867_s1 = inlined_call_operand.vmem [shape: f32[64,1], index: 1, kind: input, shape index: {}]   ;;  %s868_s2 = inlined_call_operand.vmem [shape: f32[64,1], index: 2, kind: input, shape index: {}]   ;;  %s869_s3 = inlined_call_operand.vmem [shape: f32[16,4], index: 3, kind: input, shape index: {}]   ;;  %s870_s4 = inlined_call_operand.vmem [shape: f32[8,16], index: 4, kind: input, shape index: {}]   ;;  %s871_s5 = inlined_call_operand.vmem [shape: f32[8,8], index: 5, kind: input, shape index: {}]   ;;  %s872_s6 = inlined_call_operand.hbm [shape: f32[8,16], index: 6, kind: output, shape index: {}]  }
   0x1   :  { %v34_v0 = vld [vmem:[%s867_s1 + $0x10] sm:$0xff]  ;;  %v32_v1 = vld [vmem:[%s867_s1] sm:$0xff]  ;;  %681 = vset.pattern.permute.xlu1 %v712_v2  ;;  %680 = vset.pattern.permute.xlu0 %v712_v2  ;;  %v35_v3 = vld [vmem:[%s867_s1 + $0x18] sm:$0xff] }
   0x2   :  { %52 = vperm.xlu1 %681, %v34_v0   ;;  %42 = vperm.xlu0 %680, %v32_v1   ;;  %v33_v4 = vld [vmem:[%s867_s1 + $0x8] sm:$0xff]  ;;  %v36_v6 = vld [vmem:[%s867_s1 + $0x20] sm:$0xff] }
   0x3   :  { %v37_v5 = vld [vmem:[%s867_s1 + $0x28] sm:$0xff] }
   0x6   :  { %57 = vperm.xlu1 %681, %v35_v3   ;;  %47 = vperm.xlu0 %680, %v33_v4  }
   0x7   :  { %11 = vsyncpa [#allocation3], 0  ;;  %v39_v7 = vld [vmem:[%s867_s1 + $0x38] sm:$0xff]  ;;  %v38_v8 = vld [vmem:[%s867_s1 + $0x30] sm:$0xff]  ;;  %vm195_vm0 = vcmask 31744   ;;  %v713_v18 = vmov 0.0  }
   0x8   :  { %v91_v9 = vld [vmem:[%s868_s2 + $0x18] sm:$0xff]  ;;  %v89_v10 = vld [vmem:[%s868_s2 + $0x8] sm:$0xff]  ;;  %v90_v11 = vld [vmem:[%s868_s2 + $0x10] sm:$0xff]  ;;  %655 = vmatprep.subr.mxu1 %v713_v18  ;;  %vm144_vm1 = vcmask 130048   ;;  %vm187_vm2 = vcmask 1040384   ;;  %vm189_vm3 = vcmask 1041408  }
   0x9   :  { %v88_v12 = vld [vmem:[%s868_s2] sm:$0xff]  ;;  %v93_v14 = vld [vmem:[%s868_s2 + $0x28] sm:$0xff]  ;;  %v94_v15 = vld [vmem:[%s868_s2 + $0x30] sm:$0xff]  ;;  %vm191_vm4 = vcmask 1042432   ;;  %vm202_vm5 = vcmask 1043456   ;;  %vm714_vm6 = vmmov 0  }
   0xa   :  { %67 = vperm.xlu1 %681, %v37_v5   ;;  %62 = vperm.xlu0 %680, %v36_v6   ;;  %v92_v13 = vld [vmem:[%s868_s2 + $0x20] sm:$0xff]  ;;  %v95_v16 = vld [vmem:[%s868_s2 + $0x38] sm:$0xff]  ;;  %v26_v20 = vld [vmem:[%s866_s0 + $0x10] sm:$0xff]  ;;  %s716_s21 = smov 8   ;;  %vm511_vm7 = vcmask 64512  }
   0xb   :  { %v193_v17 = vld [vmem:[%s869_s3] sm:$0xff]  ;;  %v27_v23 = vld [vmem:[%s866_s0 + $0x18] sm:$0xff]  ;;  %v25_v24 = vld [vmem:[%s866_s0 + $0x8] sm:$0xff]  ;;  %659 = vmatprep.mubr.msk.f32.mxu1 %vm714_vm6, %v713_v18 }
   0xc   :  { %652 = vmatprep.mubr.msk.f32.mxu0 %vm195_vm0, %v193_v17  ;;  %v24_v22 = vld [vmem:[%s866_s0] sm:$0xff]  ;;  %v29_v31 = vld [vmem:[%s866_s0 + $0x28] sm:$0xff]  ;;  %v31_v45 = vld [vmem:[%s866_s0 + $0x38] sm:$0xff] }
   0xd   :  { %v28_v32 = vld [vmem:[%s866_s0 + $0x20] sm:$0xff]  ;;  %v30_v46 = vld [vmem:[%s866_s0 + $0x30] sm:$0xff] }
   0xe   :  { %77 = vperm.xlu1 %681, %v39_v7   ;;  %72 = vperm.xlu0 %680, %v38_v8  }
  0x12   :  { %113 = vperm.xlu1 %681, %v91_v9   ;;  %103 = vperm.xlu0 %680, %v89_v10  }
  0x16   :  { %108 = vperm.xlu1 %681, %v90_v11   ;;  %98 = vperm.xlu0 %680, %v88_v12  }
  0x1a   :  { %118 = vperm.xlu1 %681, %v92_v13   ;;  %123 = vperm.xlu0 %680, %v93_v14  }
  0x1e   :  { %128 = vperm.xlu1 %681, %v94_v15   ;;  %133 = vperm.xlu0 %680, %v95_v16  }
  0x7d   :  { %v53_v19 = vpop.permute.xlu1 %52  ;;  %v43_v21 = vpop.permute.xlu0 %42 }
  0x7e   :  { %v82_v25 = vmul.f32 %v53_v19, %v26_v20  ;;  %v80_v26 = vmul.f32 %v43_v21, %v24_v22 }
  0x80   :  { %v154_v33 = vsel %vm144_vm1, %v82_v25, 0.0  ;;  %v145_v34 = vsel %vm144_vm1, %v80_v26, 0.0 }
  0x81   :  { %v58_v27 = vpop.permute.xlu1 %57  ;;  %v48_v28 = vpop.permute.xlu0 %47 }
  0x82   :  { %v83_v29 = vmul.f32 %v58_v27, %v27_v23  ;;  %v81_v30 = vmul.f32 %v48_v28, %v25_v24 }
  0x84   :  { %v155_v35 = vsel %vm144_vm1, %v83_v29, 0.0  ;;  %v146_v36 = vsel %vm144_vm1, %v81_v30, 0.0 }
  0x85   :  { %v156_v37 = vadd.f32 %v155_v35, %v154_v33  ;;  %v147_v38 = vadd.f32 %v146_v36, %v145_v34  ;;  %v68_v39 = vpop.permute.xlu1 %67  ;;  %v63_v40 = vpop.permute.xlu0 %62 }
  0x86   :  { %v85_v41 = vmul.f32 %v68_v39, %v29_v31  ;;  %v84_v42 = vmul.f32 %v63_v40, %v28_v32 }
  0x87   :  { %v157_v43 = vrot.slane %v156_v37, 4  ;;  %v148_v44 = vrot.slane %v147_v38, 4 }
  0x88   :  { %v166_v47 = vsel %vm144_vm1, %v85_v41, 0.0  ;;  %v165_v48 = vsel %vm144_vm1, %v84_v42, 0.0 }
  0x89   :  { %v158_v49 = vadd.f32 %v157_v43, %v156_v37  ;;  %v149_v50 = vadd.f32 %v148_v44, %v147_v38  ;;  %v167_v51 = vadd.f32 %v166_v47, %v165_v48  ;;  %v78_v52 = vpop.permute.xlu1 %77  ;;  %v73_v53 = vpop.permute.xlu0 %72 }
  0x8a   :  { %v87_v54 = vmul.f32 %v78_v52, %v31_v45  ;;  %v86_v55 = vmul.f32 %v73_v53, %v30_v46 }
  0x8b   :  { %v159_v56 = vrot.slane %v158_v49, 2  ;;  %v150_v57 = vrot.slane %v149_v50, 2  ;;  %v168_v58 = vrot.slane %v167_v51, 4 }
  0x8c   :  { %v177_v59 = vsel %vm144_vm1, %v87_v54, 0.0  ;;  %v176_v60 = vsel %vm144_vm1, %v86_v55, 0.0  ;;  %v514_v54 = vld [vmem:[%s870_s4] sm:$0xff]  ;;  %s717_s4 = smov [#allocation2]  }
  0x8d   :  { %v160_v61 = vadd.f32 %v159_v56, %v158_v49  ;;  %v151_v62 = vadd.f32 %v150_v57, %v149_v50  ;;  %v169_v63 = vadd.f32 %v168_v58, %v167_v51  ;;  %v178_v0 = vadd.f32 %v177_v59, %v176_v60  ;;  %v114_v1 = vpop.permute.xlu1 %113  ;;  %v104_v2 = vpop.permute.xlu0 %103  ;;  %v513_v60 = vld [vmem:[%s871_s5] sm:$0xff]  ;;  %s624_s5 = sshll.u32 %s717_s4, 4  ;;  %s625_s5 = int_to_ptr.vmem [resolvable:$true] %s624_s5 }
  0x8e   :  { %v139_v13 = vmul.f32 %v114_v1, %v27_v23  ;;  %v137_v14 = vmul.f32 %v104_v2, %v25_v24  ;;  %s690_s26 = scalar_lea.vmem %s625_s5, 128  ;;  %p695_p1 = scmp.lt.s32.totalorder %s625_s5, %s625_s5 }
  0x8f   :  { %v170_v3 = vrot.slane %v169_v63, 2  ;;  %v179_v4 = vrot.slane %v178_v0, 4  ;;  %v152_v5 = vrot.slane %v151_v62, 1  ;;  %v161_v6 = vrot.slane %v160_v61, 1  ;;  %p691_p0 = scmp.ne.s32.totalorder %s625_s5, %s690_s26  ;;  %p696_p2 = scmp.lt.s32.totalorder %s690_s26, %s690_s26 }
  0x90   :  { %v164_v30 = vadd.f32 %v139_v13, %v137_v14 }
  0x91   :  { %v171_v7 = vadd.f32 %v170_v3, %v169_v63  ;;  %v180_v8 = vadd.f32 %v179_v4, %v178_v0  ;;  %v109_v9 = vpop.permute.xlu1 %108  ;;  %v99_v10 = vpop.permute.xlu0 %98  ;;  %v153_v15 = vadd.f32 %v152_v5, %v151_v62  ;;  %v162_v25 = vadd.f32 %v161_v6, %v160_v61  ;;  %p697_p3 = por %p696_p2, %p695_p1 }
  0x92   :  { %v138_v16 = vmul.f32 %v109_v9, %v26_v20  ;;  %v136_v17 = vmul.f32 %v99_v10, %v24_v22 }
  0x93   :  { %v181_v11 = vrot.slane %v180_v8, 2  ;;  %v172_v12 = vrot.slane %v171_v7, 1  ;;  %v188_v24 = vsel %vm187_vm2, %v153_v15, %v162_v25  ;;  %p698_p4 = pnand %p697_p3, %p691_p0 }
  0x94   :  { %v163_v34 = vadd.f32 %v138_v16, %v136_v17 }
  0x95   :  { %v119_v19 = vpop.permute.xlu1 %118  ;;  %v124_v21 = vpop.permute.xlu0 %123  ;;  %v182_v26 = vadd.f32 %v181_v11, %v180_v8  ;;  %v173_v28 = vadd.f32 %v172_v12, %v171_v7 }
  0x96   :  { %v141_v27 = vmul.f32 %v124_v21, %v29_v31  ;;  %v140_v33 = vmul.f32 %v119_v19, %v28_v32  ;;  %v194_v31 = vld [vmem:[%s869_s3 + $0x8] sm:$0xff]  ;;  %s715_s3 = smov 120  }
  0x97   :  { %v183_v29 = vrot.slane %v182_v26, 1  ;;  %v190_v38 = vsel %vm189_vm3, %v188_v24, %v173_v28 }
  0x98   :  { %v175_v20 = vadd.f32 %v164_v30, %v141_v27  ;;  %v174_v40 = vadd.f32 %v163_v34, %v140_v33 }
  0x99   :  { %v129_v35 = vpop.permute.xlu1 %128  ;;  %v134_v36 = vpop.permute.xlu0 %133  ;;  %v184_v23 = vadd.f32 %v183_v29, %v182_v26 }
  0x9a   :  { %v142_v22 = vmul.f32 %v129_v35, %v30_v46  ;;  %v143_v37 = vmul.f32 %v134_v36, %v31_v45 }
  0x9b   :  { %v192_v39 = vsel %vm191_vm4, %v190_v38, %v184_v23 }
  0x9c   :  { %650 = vmatprep.subr.msk.mxu0 %vm202_vm5, %v192_v39  ;;  %v186_v41 = vadd.f32 %v175_v20, %v143_v37  ;;  %v185_v32 = vadd.f32 %v174_v40, %v142_v22 }
  0x9d   :  { %651 = vmatpush3.msk.msra.mxu0 %vm202_vm5, %v192_v39 }
  0x9e   :  { %653 = vmatmul.mubr.msk.f32.vlgmr.msra.gmra.mxu0 %vm195_vm0, %v194_v31  ;;  %656 = vmatpush3.msra.mxu1 %v186_v41 }
  0x9f   :  { %657 = vmatprep.subr.mxu1 %v713_v18  ;;  %662 = vmatprep.subr.mxu0 %v713_v18 }
  0xa0   :  { %658 = vmatpush3.msra.mxu1 %v185_v32  ;;  %666 = vmatprep.mubr.msk.f32.mxu0 %vm714_vm6, %v713_v18 }
  0xa1   :  { %669 = vmatprep.subr.mxu1 %v713_v18 }
 0x15e   :  { %v654_v42 = vpop.f32.mrf.mxu0 }
 0x15f   :  { %390 = vrot.lane.b32.xlu1 %v654_v42, %s715_s3 }
 0x160   :  { %v272_v43 = vpop.f32.mrf.mxu0 }
 0x161   :  { %388 = vrot.lane.b32.xlu0 %v272_v43, %s715_s3 }
 0x163   :  { %428 = vrot.lane.b32.xlu1 %v185_v32, %s715_s3 }
 0x165   :  { %430 = vrot.lane.b32.xlu0 %v186_v41, %s715_s3 }
 0x18c   :  { %281 = vxpose.xlu1.b32.start [1/2] (short) (narrow) %v272_v43, 8 }
 0x190   :  { %282 = vxpose.xlu1.b32.end [2/2] (short) (narrow) %v654_v42, 8 }
 0x1d1   :  { %v391_v44 = vpop.permute.xlu1 %390 }
 0x1d3   :  { %v389_v45 = vpop.permute.xlu0 %388 }
 0x1d4   :  { %394 = vxpose.xlu0.b32.start [1/2] (short) (narrow) %v389_v45, 8 }
 0x1d5   :  { %v429_v47 = vpop.permute.xlu1 %428 }
 0x1d7   :  { %v431_v46 = vpop.permute.xlu0 %430 }
 0x1d8   :  { %395 = vxpose.xlu0.b32.end [2/2] (short) (narrow) %v391_v44, 8  ;;  %663 = vmatpush3.msra.mxu0 %v431_v46 }
 0x1d9   :  { %664 = vmatprep.subr.mxu0 %v713_v18 }
 0x1da   :  { %665 = vmatpush3.msra.mxu0 %v429_v47 }
 0x208   :  { %v297_v48 = vpop.trf.xlu1 }
 0x209   :  { %660 = vmatmul.mubr.msk.f32.vlgmr.msra.gmra.mxu1 %vm144_vm1, %v297_v48 }
 0x20a   :  { %671 = vmatprep.mubr.msk.f32.mxu1 %vm714_vm6, %v713_v18 }
 0x250   :  { %v410_v49 = vpop.trf.xlu0 }
 0x251   :  { %667 = vmatmul.mubr.msk.f32.vlgmr.msra.gmra.mxu0 %vm144_vm1, %v410_v49 }
 0x2c9   :  { %v382_v50 = vpop.f32.mrf.mxu1 }
 0x2cb   :  { %v661_v51 = vpop.f32.mrf.mxu1 }
 0x311   :  { %v503_v52 = vpop.f32.mrf.mxu0 }
 0x312   :  { %508 = vrot.lane.b32.xlu0 %v503_v52, %s716_s21 }
 0x313   :  { %v668_v53 = vpop.f32.mrf.mxu0 }
 0x384   :  { %v509_v55 = vpop.permute.xlu0 %508 }
 0x385   :  { %v512_v56 = vsel %vm511_vm7, %v382_v50, %v509_v55 }
 0x386   :  { %v515_v57 = vadd.f32 %v514_v54, %v512_v56 }
 0x388   :  { %v637_v58 = vmul.f32 -1.442695, %v515_v57 }
 0x38a   :  { %682 = vpow2.f32 %v637_v58 }
 0x397   :  { %v683_v18 = vpop.eup %682 }
 0x398   :  { %v519_v59 = vadd.f32 1.0, %v683_v18 }
 0x39a   :  { %684 = vrcp.f32 %v519_v59 }
 0x3a7   :  { %v685_v61 = vpop.eup %684 }
 0x3a8   :  { %670 = vmatpush3.msra.mxu1 %v685_v61 }
 0x3a9   :  { %672 = vmatmul.mubr.msk.f32.vlgmr.msra.gmra.mxu1 %vm511_vm7, %v513_v60 }
 0x469   :  { %v591_v62 = vpop.f32.mrf.mxu1 }
 0x46a   :  { %v595_v63 = vsel %vm144_vm1, %v591_v62, -inf }
 0x46b   :  { %v596_v0 = vrot.slane %v595_v63, 4  ;;  %v673_v1 = vpop.f32.mrf.mxu1 }
 0x46d   :  { %v597_v2 = vmax.f32 %v595_v63, %v596_v0 }
 0x46f   :  { %v598_v3 = vrot.slane %v597_v2, 2 }
 0x471   :  { %v599_v4 = vmax.f32 %v597_v2, %v598_v3 }
 0x473   :  { %v600_v5 = vrot.slane %v599_v4, 1 }
 0x475   :  { %v601_v6 = vmax.f32 %v599_v4, %v600_v5 }
 0x477   :  { %v602_v7 = vsub.f32 %v591_v62, %v601_v6 }
 0x479   :  { %v603_v8 = vmul.f32 1.442695, %v602_v7 }
 0x47b   :  { %686 = vpow2.f32 %v603_v8 }
 0x488   :  { %v687_v9 = vpop.eup %686 }
 0x489   :  { %v605_v10 = vsel %vm144_vm1, %v687_v9, 0.0 }
 0x48a   :  { %v606_v11 = vrot.slane %v605_v10, 4 }
 0x48c   :  { %v607_v12 = vadd.f32 %v606_v11, %v605_v10 }
 0x48e   :  { %v608_v13 = vrot.slane %v607_v12, 2 }
 0x490   :  { %v609_v14 = vadd.f32 %v608_v13, %v607_v12 }
 0x492   :  { %v610_v15 = vrot.slane %v609_v14, 1 }
 0x494   :  { %v611_v16 = vadd.f32 %v610_v15, %v609_v14 }
 0x496   :  { %688 = vrcp.f32 %v611_v16 }
 0x4a3   :  { %v689_v17 = vpop.eup %688 }
 0x4a4   :  { %v613_v19 = vmul.f32 %v689_v17, %v611_v16 }
 0x4a6   :  { %v614_v21 = vsub.f32 2.0, %v613_v19 }
 0x4a8   :  { %v615_v25 = vmul.f32 %v689_v17, %v614_v21 }
 0x4aa   :  { %v616_v26 = vmul.f32 %v687_v9, %v615_v25 }
 0x4ac   :  { %617 = vst.msk [vmem:[#allocation2] sm:$0xff] %vm144_vm1, %v616_v26 }
 0x4ad   :  { %701 = shalt.err (!%p698_p4)
}
 0x4ae   :  { %627 = dma.vmem_to_hbm [thread:$0]  %s625_s5, 128, %s872_s6, [#allocation3]  }
 0x4af   :  { %710 = dma.done.wait [#allocation3], 128  }
 0x4b0   :  { %711 = vsyncadd [#allocation3], 4294967168 }
 0x4b1   :  { %631 = vsyncpa [#allocation3], 1 }

</bundles_post_ra>
